<compile_context>
chip_gen: v6e
topology: v6e:2x2x1
jax: 0.10.0
libtpu: 0.0.40
codegen_flags: <defaults>
</compile_context>

<pallas_src>
import jax
import jax.numpy as jnp
from jax.experimental import pallas as pl
from jax.experimental.pallas import tpu as pltpu


_SMALL_O_MAX = 8   # up to this many output rows, the VPU/XLU path beats the MXU


# ---------------------------------------------------------------------------
# Kernels
# ---------------------------------------------------------------------------

def _baseline_o1_kernel(h_ref, w_ref, b_ref, o_ref):
    """O == 1 fast path (the actual RAM baseline head).

    h_ref: (N, H) VMEM activations
    w_ref: (1, H) VMEM weight row (native nn.Linear (O, H) layout)
    b_ref: (1,)   SMEM f32 scalar bias
    o_ref: (1, N) VMEM lane-dense output row
    """
    # Keep the explicit f32 upcast: portable to v5e (no bf16 VPU datapath).
    h = h_ref[...].astype(jnp.float32)
    w = w_ref[...].astype(jnp.float32)              # (1, H) broadcasts over rows
    prod = h * w                                    # VPU elementwise multiply
    acc = jnp.sum(prod, axis=-1, keepdims=True)     # XLU cross-lane reduce -> (N, 1)
    # One cheap XLU transpose so the store is a single lane-dense row instead of
    # ceil(N/8) masked column stores.
    o_ref[...] = (acc + b_ref[0]).T.astype(o_ref.dtype)         # (1, N)


def _baseline_smallo_kernel(h_ref, w_ref, b_ref, o_ref):
    """1 < O <= 8: per-output-row VPU multiply + XLU reduce; no MXU.

    h_ref: (N, H) VMEM
    w_ref: (O, H) VMEM (native nn.Linear layout)
    b_ref: (O,)   SMEM f32
    o_ref: (O, N) VMEM lane-dense output (transposed back to (N, O) in wrapper)
    """
    h = h_ref[...].astype(jnp.float32)
    n_out = o_ref.shape[0]
    for o in range(n_out):                                       # tiny static unroll
        w_row = w_ref[pl.ds(o, 1), :].astype(jnp.float32)        # (1, H)
        acc = jnp.sum(h * w_row, axis=-1, keepdims=True)         # (N, 1)
        o_ref[pl.ds(o, 1), :] = (acc + b_ref[o]).T.astype(o_ref.dtype)   # (1, N)


def _baseline_general_kernel(h_ref, wt_ref, b_ref, o_ref):
    """O > 8 fallback: natural (N,H) x (H,O) MXU contraction.

    wt_ref: (H, O) VMEM -- weight transposed ONCE, wrapper-side, for this path
            only (no transposed-RHS re-staging inside Mosaic).
    b_ref : (1, O) VMEM
    o_ref : (N, O) VMEM
    """
    acc = jnp.dot(h_ref[...], wt_ref[...], preferred_element_type=jnp.float32)
    o_ref[...] = (acc + b_ref[...].astype(jnp.float32)).astype(o_ref.dtype)


# ---------------------------------------------------------------------------
# Wrappers
# ---------------------------------------------------------------------------

def _linear_pallas(h2d, weight, bias):
    """h2d: (N, H); weight: (O, H) [PyTorch layout]; bias: (O,). Returns (N, O)."""
    N, H = h2d.shape
    O = weight.shape[0]
    itemsize = jnp.dtype(h2d.dtype).itemsize
    cost = pl.CostEstimate(
        flops=2 * N * H * O,
        transcendentals=0,
        bytes_accessed=(N * H + O * H + N * O) * itemsize + O * 4,
    )
    bias_f32 = bias.astype(jnp.float32)   # SMEM scalars want a 32-bit dtype

    if O == 1:
        out_row = pl.pallas_call(
            _baseline_o1_kernel,
            out_shape=jax.ShapeDtypeStruct((1, N), h2d.dtype),
            in_specs=[
                pl.BlockSpec(memory_space=pltpu.MemorySpace.VMEM),
                pl.BlockSpec(memory_space=pltpu.MemorySpace.VMEM),
                pl.BlockSpec(memory_space=pltpu.MemorySpace.SMEM),
            ],
            out_specs=pl.BlockSpec(memory_space=pltpu.MemorySpace.VMEM),
            cost_estimate=cost,
        )(h2d, weight, bias_f32)
        return out_row.reshape(N, 1)            # free layout glue in the wrapper

    if O <= _SMALL_O_MAX:
        out_t = pl.pallas_call(
            _baseline_smallo_kernel,
            out_shape=jax.ShapeDtypeStruct((O, N), h2d.dtype),
            in_specs=[
                pl.BlockSpec(memory_space=pltpu.MemorySpace.VMEM),
                pl.BlockSpec(memory_space=pltpu.MemorySpace.VMEM),
                pl.BlockSpec(memory_space=pltpu.MemorySpace.SMEM),
            ],
            out_specs=pl.BlockSpec(memory_space=pltpu.MemorySpace.VMEM),
            cost_estimate=cost,
        )(h2d, weight, bias_f32)
        return out_t.T                          # tiny (O, N) -> (N, O)

    # Large-O fallback: transpose the weight once (this path only) so the MXU
    # gets the natural (N,H)x(H,O) contraction.
    wt = weight.T
    b2 = bias.reshape(1, O)
    return pl.pallas_call(
        _baseline_general_kernel,
        out_shape=jax.ShapeDtypeStruct((N, O), h2d.dtype),
        in_specs=[
            pl.BlockSpec(memory_space=pltpu.MemorySpace.VMEM),
            pl.BlockSpec(memory_space=pltpu.MemorySpace.VMEM),
            pl.BlockSpec(memory_space=pltpu.MemorySpace.VMEM),
        ],
        out_specs=pl.BlockSpec(memory_space=pltpu.MemorySpace.VMEM),
        cost_estimate=cost,
    )(h2d, wt, b2)


def baseline_network(h_t, weight, bias):
    """Module forward: h_t (1, B, H) [or (B, H)] -> b_t (B, O).

    `.detach()` is a no-op for a pure forward pass; `.squeeze(0)` is wrapper glue.
    """
    h = h_t[0] if h_t.ndim == 3 else h_t
    return _linear_pallas(h, weight, bias)


def baseline_network_batched(h_stack, weight, bias):
    """Amortized variant: all T RAM timesteps in ONE pallas_call.

    h_stack: (T, B, H) -> (T, B, O). At (B=8, H=32, O=1) the per-call overhead
    dominates the ~3-KFLOP projection, so batching timesteps is the main lever
    available inside this module (true fix is fusing into the h_t producer).
    """
    T, B, H = h_stack.shape
    out = _linear_pallas(h_stack.reshape(T * B, H), weight, bias)
    return out.reshape(T, B, -1)


def init_linear_params(key, input_size, output_size, dtype=jnp.float32):
    # Deterministic init mimicking nn.Linear's uniform(-1/sqrt(fan_in), +1/sqrt(fan_in)).
    kw, kb = jax.random.split(key)
    bound = 1.0 / jnp.sqrt(jnp.asarray(input_size, dtype))
    weight = jax.random.uniform(kw, (output_size, input_size), dtype,
                                minval=-bound, maxval=bound)
    bias = jax.random.uniform(kb, (output_size,), dtype,
                              minval=-bound, maxval=bound)
    return weight, bias


if __name__ == "__main__":
    key = jax.random.PRNGKey(0)
    k_h, k_p, k_s, k_p4, k_p16 = jax.random.split(key, 5)

    batch = 8
    input_size = 32      # hidden size of the RAM core network
    output_size = 1      # scalar baseline b_t per example
    T = 6                # number of glimpses / timesteps for the batched path

    # --- single-timestep forward (matches the PyTorch module exactly) ---------
    h_t = jax.random.normal(k_h, (1, batch, input_size), dtype=jnp.float32)
    weight, bias = init_linear_params(k_p, input_size, output_size)

    b_t = jax.block_until_ready(baseline_network(h_t, weight, bias))
    ref = h_t[0] @ weight.T + bias
    assert b_t.shape == (batch, output_size)
    assert jnp.allclose(b_t, ref, atol=1e-5, rtol=1e-5)

    # --- all timesteps batched into one pallas_call ---------------------------
    h_stack = jax.random.normal(k_s, (T, batch, input_size), dtype=jnp.float32)
    b_all = jax.block_until_ready(baseline_network_batched(h_stack, weight, bias))
    ref_all = h_stack @ weight.T + bias
    assert b_all.shape == (T, batch, output_size)
    assert jnp.allclose(b_all, ref_all, atol=1e-5, rtol=1e-5)

    # --- tiny-O path (VPU/XLU per-row, lane-dense (O, N) output) --------------
    w4, b4 = init_linear_params(k_p4, input_size, 4)
    y4 = jax.block_until_ready(baseline_network(h_t, w4, b4))
    ref4 = h_t[0] @ w4.T + b4
    assert y4.shape == (batch, 4)
    assert jnp.allclose(y4, ref4, atol=1e-5, rtol=1e-5)

    # --- large-O fallback (natural-contraction MXU path) ----------------------
    w16, b16 = init_linear_params(k_p16, input_size, 16)
    y16 = jax.block_until_ready(baseline_network(h_t, w16, b16))
    ref16 = h_t[0] @ w16.T + b16
    assert y16.shape == (batch, 16)
    assert jnp.allclose(y16, ref16, atol=1e-5, rtol=1e-5)

    print("KERNEL_OK")
</pallas_src>

<mosaic_0001>
module attributes {stable_mosaic.version = 11 : i64} {
  func.func @_baseline_o1_kernel(%arg0: memref<8x32xf32, #tpu.memory_space<vmem>>, %arg1: memref<1x32xf32, #tpu.memory_space<vmem>>, %arg2: memref<1xf32, #tpu.memory_space<smem>>, %arg3: memref<1x8xf32, #tpu.memory_space<vmem>>) attributes {dimension_semantics = [], scalar_prefetch = 0 : i64, scratch_operands = 0 : i64, tpu.core_type = #tpu.core_type<tc>} {
    %c0 = arith.constant 0 : index
    %c0_0 = arith.constant 0 : index
    %0 = vector.load %arg0[%c0, %c0_0] : memref<8x32xf32, #tpu.memory_space<vmem>>, vector<8x32xf32>
    %c0_1 = arith.constant 0 : index
    %c0_2 = arith.constant 0 : index
    %1 = vector.load %arg1[%c0_1, %c0_2] : memref<1x32xf32, #tpu.memory_space<vmem>>, vector<1x32xf32>
    %2 = vector.broadcast %1 : vector<1x32xf32> to vector<8x32xf32>
    %3 = arith.mulf %0, %2 : vector<8x32xf32>
    %cst = arith.constant dense<0.000000e+00> : vector<8xf32>
    %4 = vector.multi_reduction <add>, %3, %cst [1] : vector<8x32xf32> to vector<8xf32>
    %5 = vector.shape_cast %4 : vector<8xf32> to vector<8x1xf32>
    %c0_3 = arith.constant 0 : index
    %6 = memref.load %arg2[%c0_3] : memref<1xf32, #tpu.memory_space<smem>>
    %7 = vector.broadcast %6 : f32 to vector<8x1xf32>
    %8 = arith.addf %5, %7 : vector<8x1xf32>
    %9 = tpu.transpose %8, [1, 0] : vector<8x1xf32> -> vector<1x8xf32>
    %c0_4 = arith.constant 0 : index
    %c0_5 = arith.constant 0 : index
    %10 = vector.load %arg3[%c0_4, %c0_5] : memref<1x8xf32, #tpu.memory_space<vmem>>, vector<1x8xf32>
    tpu.vector_store %arg3[%c0_4, %c0_5], %9 {strides = array<i32>} : memref<1x8xf32, #tpu.memory_space<vmem>>, vector<1x8xf32>,
    return
  }
}

</mosaic_0001>

<bundles_post_ra>
// kernel: tpu_custom_call.1
= control target key start
LH: loop header
LB: loop body
LE: loop exit
PB: predicated region body
PF: predicated region fallthrough
CT: control target
= control target key end

     0   :  { %9 = vsyncpa [#allocation4], 0  ;;  %s175_s0 = inlined_call_operand.hbm [shape: f32[8,32], index: 0, kind: input, shape index: {}]   ;;  %s176_s1 = inlined_call_operand.vmem [shape: f32[1,32], index: 1, kind: input, shape index: {}]   ;;  %s177_s2 = inlined_call_operand.<no memory space> [shape: f32[1], index: 2, kind: input, shape index: {}]   ;;  %s178_s3 = inlined_call_operand.hbm [shape: f32[1,8], index: 3, kind: output, shape index: {}]  }
   0x1   :  { %10 = vsyncpa [#allocation5], 0  ;;  %s141_s12 = smov [#allocation3]  }
   0x2   :  { %s17_s13 = sshll.u32 %s141_s12, 4  ;;  %s18_s13 = int_to_ptr.vmem [resolvable:$true] %s17_s13 }
   0x3   :  { %s105_s14 = scalar_lea.vmem %s18_s13, 128  ;;  %p110_p1 = scmp.lt.s32.totalorder %s18_s13, %s18_s13 }
   0x4   :  { %p106_p0 = scmp.ne.s32.totalorder %s18_s13, %s105_s14  ;;  %p111_p2 = scmp.lt.s32.totalorder %s105_s14, %s105_s14 }
   0x6   :  { %p112_p3 = por %p111_p2, %p110_p1 }
   0x8   :  { %p113_p4 = pnand %p112_p3, %p106_p0 }
   0xa   :  { %116 = shalt.err (!%p113_p4)
}
   0xb   :  { %20 = dma.hbm_to_vmem [thread:$0]  %s175_s0, 128, %s18_s13, [#allocation4]  }
   0xc   :  { %137 = dma.done.wait [#allocation4], 128  }
   0xd   :  { %138 = vsyncadd [#allocation4], 4294967168  ;;  %v28_v0 = vld [vmem:[#allocation3] sm:$0xff]  ;;  %vm37_vm0 = vcmask 261120   ;;  %v42_v4 = vstv %s177_s2  ;;  %s142_s21 = smov [#allocation6]   ;;  %vm76_vm1 = vcmask 57344  }
   0xe   :  { %v93_v1 = vld [vmem:[%s176_s1] ss:$0 sm:$0xff]  ;;  %s84_s0 = sshll.u32 %s142_s21, 4  ;;  %s85_s0 = int_to_ptr.vmem [resolvable:$true] %s84_s0 }
   0xf   :  { %v36_v2 = vmul.f32 %v93_v1, %v28_v0  ;;  %s117_s22 = scalar_lea.vmem %s85_s0, 16  ;;  %s121_s1 = scalar_lea.vmem %s85_s0, 32 }
  0x10   :  { %p118_p5 = scmp.ne.s32.totalorder %s85_s0, %s117_s22  ;;  %p122_p6 = scmp.lt.s32.totalorder %s85_s0, %s85_s0 }
  0x11   :  { %v38_v3 = vsel %vm37_vm0, %v36_v2, 0.0  ;;  %p123_p7 = scmp.lt.s32.totalorder %s121_s1, %s117_s22 }
  0x12   :  { %39 = vadd.xlane.f32.xlu0 %v38_v3 }
  0x13   :  { %p124_p8 = por %p123_p7, %p122_p6 }
  0x15   :  { %p125_p9 = pnand %p124_p8, %p118_p5 }
  0x9b   :  { %v40_v5 = vpop.xlane.xlu0 %39 }
  0x9c   :  { %v43_v6 = vadd.f32 %v42_v4, %v40_v5 }
  0x9e   :  { %44 = vxpose.xlu0.b32.start.end [1/1] (short) (narrow) %v43_v6, 8 }
 0x11a   :  { %v60_v7 = vpop.trf.xlu0 }
 0x11b   :  { %77 = vst.msk [vmem:[#allocation6] sm:$0x1] %vm76_vm1, %v60_v7 }
 0x11c   :  { %128 = shalt.err (!%p125_p9)
}
 0x11d   :  { %87 = dma.vmem_to_hbm [thread:$0]  %s85_s0, 16, %s178_s3, [#allocation5]  }
 0x11e   :  { %139 = dma.done.wait [#allocation5], 16  }
 0x11f   :  { %140 = vsyncadd [#allocation5], 4294967280 }
 0x120   :  { %91 = vsyncpa [#allocation4], 1 }
 0x121   :  { %92 = vsyncpa [#allocation5], 1 }

</bundles_post_ra>
